<compile_context>
chip_gen: v6e
topology: v6e:2x2x1
jax: 0.10.0
libtpu: 0.0.40
codegen_flags: <defaults>
</compile_context>

<pallas_src>
import jax
import jax.numpy as jnp
from jax import lax
from jax.experimental import pallas as pl
from jax.experimental.pallas import tpu as pltpu


# --------------------------------------------------------------------------
# Pallas kernels
# --------------------------------------------------------------------------
def _backbone_kernel(x_ref, w_ref, scale_ref, shift_ref, out_ref):
    """conv3x3(pad=1) + folded BN + ReLU + global average pool for one image.

    x_ref:     (1, H+2, W+2, C) padded NHWC image (f32)
    w_ref:     (9, C, F)        conv weight per (di, dj) tap (bf16)
    scale_ref: (1, F)           eval-mode BN folded scale (f32)
    shift_ref: (1, F)           eval-mode BN folded shift (f32)
    out_ref:   (1, 1, F)        pooled features (f32)
    """
    Hp, Wp, C = x_ref.shape[1], x_ref.shape[2], x_ref.shape[3]
    H, W = Hp - 2, Wp - 2
    F = w_ref.shape[2]
    x = x_ref[0]                                            # (Hp, Wp, C)
    acc = jnp.zeros((H * W, F), jnp.float32)
    for idx in range(9):                                    # unrolled 3x3 taps
        di, dj = idx // 3, idx % 3
        patch = x[di:di + H, dj:dj + W, :].reshape(H * W, C)
        acc = acc + jnp.dot(patch.astype(jnp.bfloat16), w_ref[idx],
                            preferred_element_type=jnp.float32)
    h = acc * scale_ref[...] + shift_ref[...]               # folded eval-mode BN
    h = jnp.maximum(h, 0.0)                                 # ReLU
    out_ref[0] = jnp.mean(h, axis=0, keepdims=True)         # AdaptiveAvgPool2d(1)


def _projection_kernel(x_ref, w1_ref, b1_ref, g_ref, beta_ref, w2_ref, b2_ref,
                       out_ref):
    """SwaVProjectionHead (Linear -> BN1d(train stats) -> ReLU -> Linear) followed
    by F.normalize(dim=1, p=2) for ONE crop (BN statistics stay per-crop)."""
    x = x_ref[0]                                            # (B, nf) bf16
    h = jnp.dot(x, w1_ref[...], preferred_element_type=jnp.float32) + b1_ref[...]
    mu = jnp.mean(h, axis=0, keepdims=True)
    d = h - mu
    var = jnp.mean(d * d, axis=0, keepdims=True)            # biased var (torch train)
    h = d * lax.rsqrt(var + 1e-5) * g_ref[...] + beta_ref[...]
    h = jnp.maximum(h, 0.0).astype(w2_ref.dtype)
    z = jnp.dot(h, w2_ref[...], preferred_element_type=jnp.float32) + b2_ref[...]
    # F.normalize eps=1e-12: z / max(||z||, 1e-12) == z * rsqrt(max(||z||^2, 1e-24))
    inv = lax.rsqrt(jnp.maximum(jnp.sum(z * z, axis=1, keepdims=True), 1e-24))
    out_ref[0] = z * inv


def _proto_normalize_kernel(w_ref, out_ref):
    # SwaVPrototypes.normalize(): row-wise L2 normalize with F.normalize eps clamp.
    w = w_ref[...]
    inv = lax.rsqrt(jnp.maximum(jnp.sum(w * w, axis=1, keepdims=True), 1e-24))
    out_ref[...] = w * inv


def _proto_matmul_kernel(x_ref, w_ref, out_ref):
    # Linear(out_dim, n_prototypes, bias=False): x @ W^T, transposed-RHS on MXU
    # (no host-side transpose of the prototype matrix).
    out_ref[...] = lax.dot_general(
        x_ref[...], w_ref[...],
        dimension_numbers=(((1,), (1,)), ((), ())),
        preferred_element_type=jnp.float32)


# --------------------------------------------------------------------------
# Wrappers (glue: reshapes / parameter plumbing only)
# --------------------------------------------------------------------------
def _row_tile(n, candidates=(512, 256, 128, 64, 32, 16)):
    # Largest row tile (multiple of 16 for bf16 sublane packing) that yields >= 2
    # grid steps; otherwise use the full matrix as one block.
    for c in candidates:
        if n % c == 0 and n // c >= 2:
            return c
    return n


def backbone_forward(x_nchw, conv_w_bf16, bn_scale, bn_shift):
    """Simplified backbone stand-in: conv3x3(pad=1) + BN + ReLU + global avg pool.
    # TODO(synk): the full torchvision resnet18 residual stack is replaced by this
    # single conv block; all SwaV-specific math downstream is implemented exactly.
    # TODO(synk): for large resolutions (e.g. 224x224) tile the HW axis with a
    # running-sum accumulator so per-image blocks fit v7x's 64 MiB VMEM.
    """
    N, C, H, W = x_nchw.shape
    F = conv_w_bf16.shape[2]
    x = jnp.transpose(x_nchw, (0, 2, 3, 1)).astype(jnp.float32)     # NHWC
    xp = jnp.pad(x, ((0, 0), (1, 1), (1, 1), (0, 0)))               # no 9x im2col
    Hp, Wp = H + 2, W + 2
    out = pl.pallas_call(
        _backbone_kernel,
        out_shape=jax.ShapeDtypeStruct((N, 1, F), jnp.float32),
        grid=(N,),
        in_specs=[
            pl.BlockSpec((1, Hp, Wp, C), lambda b: (b, 0, 0, 0)),
            pl.BlockSpec((9, C, F), lambda b: (0, 0, 0)),
            pl.BlockSpec((1, F), lambda b: (0, 0)),
            pl.BlockSpec((1, F), lambda b: (0, 0)),
        ],
        out_specs=pl.BlockSpec((1, 1, F), lambda b: (b, 0, 0)),
        compiler_params=pltpu.CompilerParams(dimension_semantics=("parallel",)),
    )(xp, conv_w_bf16, bn_scale, bn_shift)
    return out.reshape(N, F)                                        # .flatten(start_dim=1)


def projection_forward(feats, params):
    """feats: (n_crops, B, nf) f32 -> (n_crops, B, out_dim), L2-normalized rows.
    One pallas_call gridded over crops; weights stay resident via constant maps."""
    nc, B, nf = feats.shape
    od = params["proj_w2"].shape[1]
    x = feats.astype(jnp.bfloat16)
    w1 = params["proj_w1"].astype(jnp.bfloat16)
    w2 = params["proj_w2"].astype(jnp.bfloat16)
    return pl.pallas_call(
        _projection_kernel,
        out_shape=jax.ShapeDtypeStruct((nc, B, od), jnp.float32),
        grid=(nc,),
        in_specs=[
            pl.BlockSpec((1, B, nf), lambda c: (c, 0, 0)),
            pl.BlockSpec((nf, nf), lambda c: (0, 0)),
            pl.BlockSpec((1, nf), lambda c: (0, 0)),
            pl.BlockSpec((1, nf), lambda c: (0, 0)),
            pl.BlockSpec((1, nf), lambda c: (0, 0)),
            pl.BlockSpec((nf, od), lambda c: (0, 0)),
            pl.BlockSpec((1, od), lambda c: (0, 0)),
        ],
        out_specs=pl.BlockSpec((1, B, od), lambda c: (c, 0, 0)),
        compiler_params=pltpu.CompilerParams(dimension_semantics=("parallel",)),
    )(x, w1, params["proj_b1"], params["proj_bn_g"], params["proj_bn_b"],
      w2, params["proj_b2"])


def prototypes_normalize(proto_w):
    P, D = proto_w.shape
    return pl.pallas_call(
        _proto_normalize_kernel,
        out_shape=jax.ShapeDtypeStruct((P, D), jnp.float32),
        grid=(1,),
        in_specs=[pl.BlockSpec((P, D), lambda i: (0, 0))],
        out_specs=pl.BlockSpec((P, D), lambda i: (0, 0)),
    )(proto_w)


def prototypes_forward(x_all, proto_w_bf16):
    """Single fused prototype matmul for every feature row (hi + lo + queue)."""
    N, D = x_all.shape
    P = proto_w_bf16.shape[0]
    x = x_all.astype(jnp.bfloat16)
    tn = _row_tile(N)
    return pl.pallas_call(
        _proto_matmul_kernel,
        out_shape=jax.ShapeDtypeStruct((N, P), jnp.float32),
        grid=(N // tn,),
        in_specs=[pl.BlockSpec((tn, D), lambda i: (i, 0)),
                  pl.BlockSpec((P, D), lambda i: (0, 0))],
        out_specs=pl.BlockSpec((tn, P), lambda i: (i, 0)),
        compiler_params=pltpu.CompilerParams(dimension_semantics=("parallel",)),
    )(x, proto_w_bf16)


# --------------------------------------------------------------------------
# SwaV forward (functional; queue state passed explicitly)
# --------------------------------------------------------------------------
def swav_forward(params, queue_state, high_resolution, low_resolution,
                 epoch=None, step=None):
    # `step` only gates prototype-gradient freezing in the reference
    # (n_steps_frozen_prototypes); it does not change forward values.
    del step

    # self.prototypes.normalize() (in-place in torch -> returned weight here);
    # normalized weight is cast to bf16 once per forward and reused everywhere.
    proto_w = prototypes_normalize(params["proto_w"])
    proto_w_bf16 = proto_w.astype(jnp.bfloat16)

    n_hi, n_lo = len(high_resolution), len(low_resolution)
    B = high_resolution[0].shape[0]
    conv_w_bf16 = params["conv_w"].astype(jnp.bfloat16)

    def run_backbone(crops):
        stacked = jnp.concatenate(crops, axis=0)                      # (n*B, C, H, W)
        f = backbone_forward(stacked, conv_w_bf16,
                             params["bn_scale"], params["bn_shift"])  # (n*B, nf)
        return f.reshape(len(crops), B, -1)

    feats = jnp.concatenate([run_backbone(high_resolution),
                             run_backbone(low_resolution)], axis=0)   # (nc, B, nf)
    proj = projection_forward(feats, params)                          # (nc, B, od)
    hi_feats = [proj[i] for i in range(n_hi)]

    # ---- _get_queue_prototypes: @torch.no_grad() memory-bank bookkeeping (glue) ----
    queue_feature_mat = None
    new_state = queue_state
    nq = 0
    if queue_state is not None:
        banks, ptrs, num_queued, queue_length, start_queue_at_epoch = queue_state
        if n_hi != len(banks):
            raise ValueError("n_queues must equal the number of high resolution inputs")
        nq = len(banks)
        queue_features, new_banks, new_ptrs = [], [], []
        for bank, ptr, f in zip(banks, ptrs, hi_feats):
            bank_before = bank                      # MemoryBankModule returns pre-update bank
            size, bsz = bank.shape[1], f.shape[0]
            if ptr + bsz >= size:                   # ring-buffer dequeue/enqueue
                new_bank = bank.at[:, ptr:].set(jnp.transpose(f[: size - ptr]))
                new_ptr = 0
            else:
                new_bank = bank.at[:, ptr:ptr + bsz].set(jnp.transpose(f))
                new_ptr = ptr + bsz
            new_banks.append(new_bank)
            new_ptrs.append(new_ptr)
            queue_features.append(jnp.transpose(bank_before, (1, 0)))  # permute(1, 0)
        num_queued = num_queued + B
        new_state = (new_banks, new_ptrs, num_queued, queue_length, start_queue_at_epoch)
        use_queue = num_queued >= queue_length
        if use_queue and start_queue_at_epoch > 0:
            if epoch is None:
                raise ValueError("epoch must be passed when start_queue_at_epoch > 0")
            if epoch < start_queue_at_epoch:
                use_queue = False
        if use_queue:
            queue_feature_mat = jnp.concatenate(queue_features, axis=0)  # (nq*QL, od)

    # ---- ONE fused prototype matmul for hi + lo (+ queue) features ----
    od = proj.shape[2]
    n_crop_rows = (n_hi + n_lo) * B
    all_feats = proj.reshape(n_crop_rows, od)
    if queue_feature_mat is not None:
        all_feats = jnp.concatenate([all_feats, queue_feature_mat], axis=0)
    all_protos = prototypes_forward(all_feats, proto_w_bf16)             # (N_total, P)

    crop_protos = all_protos[:n_crop_rows].reshape(n_hi + n_lo, B, -1)
    hi_protos = [crop_protos[i] for i in range(n_hi)]
    lo_protos = [crop_protos[n_hi + i] for i in range(n_lo)]
    queue_protos = None
    if queue_feature_mat is not None:
        qp = all_protos[n_crop_rows:].reshape(nq, -1, all_protos.shape[1])
        queue_protos = [qp[i] for i in range(nq)]

    return (hi_protos, lo_protos, queue_protos), new_state, proto_w


# --------------------------------------------------------------------------
# Deterministic parameter / state init
# --------------------------------------------------------------------------
def init_params(key, in_channels, num_ftrs, out_dim, n_prototypes):
    k = jax.random.split(key, 6)
    conv_w = (jax.random.normal(k[0], (3, 3, in_channels, num_ftrs), jnp.float32)
              * 0.1).reshape(9, in_channels, num_ftrs)      # (KH,KW,C,F) -> (9, C, F)
    return dict(
        conv_w=conv_w,
        bn_scale=jnp.ones((1, num_ftrs), jnp.float32),
        bn_shift=jnp.zeros((1, num_ftrs), jnp.float32),
        proj_w1=jax.random.normal(k[1], (num_ftrs, num_ftrs), jnp.float32)
        / jnp.sqrt(num_ftrs * 1.0),
        proj_b1=jax.random.normal(k[2], (1, num_ftrs), jnp.float32) * 0.01,
        proj_bn_g=jnp.ones((1, num_ftrs), jnp.float32),
        proj_bn_b=jnp.zeros((1, num_ftrs), jnp.float32),
        proj_w2=jax.random.normal(k[3], (num_ftrs, out_dim), jnp.float32)
        / jnp.sqrt(num_ftrs * 1.0),
        proj_b2=jax.random.normal(k[4], (1, out_dim), jnp.float32) * 0.01,
        proto_w=jax.random.normal(k[5], (n_prototypes, out_dim), jnp.float32),
    )


def init_queue_state(key, n_queues, queue_length, out_dim, start_queue_at_epoch=0):
    keys = jax.random.split(key, n_queues)
    banks = []
    for kk in keys:
        b = jax.random.normal(kk, (out_dim, queue_length), jnp.float32)
        b = b / jnp.maximum(jnp.sqrt(jnp.sum(b * b, axis=0, keepdims=True)), 1e-12)
        banks.append(b)                                      # F.normalize(bank, dim=0)
    return (banks, [0] * n_queues, 0, queue_length, start_queue_at_epoch)


# --------------------------------------------------------------------------
if __name__ == "__main__":
    key = jax.random.PRNGKey(0)
    k_params, k_queue, k_hi, k_lo = jax.random.split(key, 4)

    B, C, H_hi, H_lo = 4, 3, 16, 8
    num_ftrs, out_dim, n_prototypes = 32, 16, 8
    n_queues, queue_length = 2, 4

    params = init_params(k_params, C, num_ftrs, out_dim, n_prototypes)
    queue_state = init_queue_state(k_queue, n_queues, queue_length, out_dim)

    hk = jax.random.split(k_hi, n_queues)
    high_resolution = [jax.random.normal(hk[i], (B, C, H_hi, H_hi), jnp.float32)
                       for i in range(n_queues)]
    lk = jax.random.split(k_lo, 2)
    low_resolution = [jax.random.normal(lk[i], (B, C, H_lo, H_lo), jnp.float32)
                      for i in range(2)]

    (hi_p, lo_p, q_p), new_state, _ = swav_forward(
        params, queue_state, high_resolution, low_resolution, epoch=0, step=0)

    outputs = hi_p + lo_p + (q_p if q_p is not None else [])
    jax.block_until_ready(outputs)

    assert all(p.shape == (B, n_prototypes) and p.dtype == jnp.float32
               for p in hi_p + lo_p)
    if q_p is not None:
        assert all(p.shape == (queue_length, n_prototypes) for p in q_p)
    print("KERNEL_OK")
</pallas_src>

<mosaic_0001>
module attributes {stable_mosaic.version = 11 : i64} {
  func.func @_proto_normalize_kernel(%arg0: i32, %arg1: memref<8x16xf32, #tpu.memory_space<vmem>>, %arg2: memref<8x16xf32, #tpu.memory_space<vmem>>) attributes {dimension_semantics = [#tpu.dimension_semantics<arbitrary>], iteration_bounds = array<i64: 1>, scalar_prefetch = 0 : i64, scratch_operands = 0 : i64, tpu.core_type = #tpu.core_type<tc>, window_params = [{pipeline_mode = #tpu.pipeline_mode<synchronous>, transform_indices = @transform_0, window_bounds = array<i64: 8, 16>}, {pipeline_mode = #tpu.pipeline_mode<synchronous>, transform_indices = @transform_1, window_bounds = array<i64: 8, 16>}]} {
    %c0 = arith.constant 0 : index
    %c0_0 = arith.constant 0 : index
    %0 = vector.load %arg1[%c0, %c0_0] : memref<8x16xf32, #tpu.memory_space<vmem>>, vector<8x16xf32>
    %1 = arith.mulf %0, %0 : vector<8x16xf32>
    %cst = arith.constant dense<0.000000e+00> : vector<8xf32>
    %2 = vector.multi_reduction <add>, %1, %cst [1] : vector<8x16xf32> to vector<8xf32>
    %3 = vector.shape_cast %2 : vector<8xf32> to vector<8x1xf32>
    %cst_1 = arith.constant 1.000000e-24 : f32
    %4 = vector.broadcast %cst_1 : f32 to vector<8x1xf32>
    %5 = arith.maximumf %3, %4 : vector<8x1xf32>
    %6 = math.rsqrt %5 : vector<8x1xf32>
    %7 = vector.broadcast %6 : vector<8x1xf32> to vector<8x16xf32>
    %8 = arith.mulf %0, %7 : vector<8x16xf32>
    %c0_2 = arith.constant 0 : index
    %c0_3 = arith.constant 0 : index
    %9 = vector.load %arg2[%c0_2, %c0_3] : memref<8x16xf32, #tpu.memory_space<vmem>>, vector<8x16xf32>
    tpu.vector_store %arg2[%c0_2, %c0_3], %8 {strides = array<i32>} : memref<8x16xf32, #tpu.memory_space<vmem>>, vector<8x16xf32>,
    return
  }
  func.func @transform_0(%arg0: i32) -> (i32, i32) {
    %c0_i32 = arith.constant 0 : i32
    %c0_i32_0 = arith.constant 0 : i32
    %c0_i32_1 = arith.constant 0 : i32
    return %c0_i32, %c0_i32_0 : i32, i32
  }
  func.func @transform_1(%arg0: i32) -> (i32, i32) {
    %c0_i32 = arith.constant 0 : i32
    %c0_i32_0 = arith.constant 0 : i32
    %c0_i32_1 = arith.constant 0 : i32
    return %c0_i32, %c0_i32_0 : i32, i32
  }
}

</mosaic_0001>

<bundles_post_ra>
// kernel: tpu_custom_call.1
= control target key start
LH: loop header
LB: loop body
LE: loop exit
PB: predicated region body
PF: predicated region fallthrough
CT: control target
= control target key end

     0   :  { %6 = vsyncpa [#allocation3], 0  ;;  %s112_s0 = inlined_call_operand.hbm [shape: f32[8,16], index: 0, kind: input, shape index: {}]   ;;  %s113_s1 = inlined_call_operand.hbm [shape: f32[8,16], index: 1, kind: output, shape index: {}]  }
   0x1   :  { %7 = vsyncpa [#allocation4], 0  ;;  %s94_s6 = smov [#allocation2]  }
   0x2   :  { %s14_s7 = sshll.u32 %s94_s6, 4  ;;  %s15_s7 = int_to_ptr.vmem [resolvable:$true] %s14_s7 }
   0x3   :  { %s58_s8 = scalar_lea.vmem %s15_s7, 128  ;;  %p63_p1 = scmp.lt.s32.totalorder %s15_s7, %s15_s7 }
   0x4   :  { %p59_p0 = scmp.ne.s32.totalorder %s15_s7, %s58_s8  ;;  %p64_p2 = scmp.lt.s32.totalorder %s58_s8, %s58_s8 }
   0x6   :  { %p65_p3 = por %p64_p2, %p63_p1 }
   0x8   :  { %p66_p4 = pnand %p65_p3, %p59_p0 }
   0xa   :  { %69 = shalt.err (!%p66_p4)
}
   0xb   :  { %17 = dma.hbm_to_vmem [thread:$0]  %s112_s0, 128, %s15_s7, [#allocation3]  }
   0xc   :  { %90 = dma.done.wait [#allocation3], 128  }
   0xd   :  { %91 = vsyncadd [#allocation3], 4294967168  ;;  %v21_v0 = vld [vmem:[#allocation2] sm:$0xff]  ;;  %vm23_vm0 = vcmask 130048   ;;  %s95_s11 = smov [#allocation5]  }
   0xe   :  { %v22_v1 = vmul.f32 %v21_v0, %v21_v0  ;;  %s37_s12 = sshll.u32 %s95_s11, 4  ;;  %s38_s12 = int_to_ptr.vmem [resolvable:$true] %s37_s12 }
   0xf   :  { %s70_s13 = scalar_lea.vmem %s38_s12, 128  ;;  %p75_p6 = scmp.lt.s32.totalorder %s38_s12, %s38_s12 }
  0x10   :  { %v24_v2 = vsel %vm23_vm0, %v22_v1, 0.0  ;;  %p71_p5 = scmp.ne.s32.totalorder %s38_s12, %s70_s13  ;;  %p76_p7 = scmp.lt.s32.totalorder %s70_s13, %s70_s13 }
  0x11   :  { %25 = vadd.xlane.f32.xlu0 %v24_v2 }
  0x12   :  { %p77_p8 = por %p76_p7, %p75_p6 }
  0x14   :  { %p78_p9 = pnand %p77_p8, %p71_p5 }
  0x9a   :  { %v26_v3 = vpop.xlane.xlu0 %25 }
  0x9b   :  { %v27_v4 = vmax.f32 %v26_v3, 1e-24 }
  0x9d   :  { %48 = vrsqrt.f32 %v27_v4 }
  0xaa   :  { %v49_v5 = vpop.eup %48 }
  0xab   :  { %v29_v6 = vmul.f32 %v49_v5, %v21_v0 }
  0xad   :  { %30 = vst.msk [vmem:[#allocation5] sm:$0xff] %vm23_vm0, %v29_v6 }
  0xae   :  { %81 = shalt.err (!%p78_p9)
}
  0xaf   :  { %40 = dma.vmem_to_hbm [thread:$0]  %s38_s12, 128, %s113_s1, [#allocation4]  }
  0xb0   :  { %92 = dma.done.wait [#allocation4], 128  }
  0xb1   :  { %93 = vsyncadd [#allocation4], 4294967168 }
  0xb2   :  { %44 = vsyncpa [#allocation3], 1 }
  0xb3   :  { %45 = vsyncpa [#allocation4], 1 }

</bundles_post_ra>
